<compile_context>
chip_gen: v7x
topology: tpu7x:2x2x1
jax: 0.10.0
libtpu: 0.0.40
codegen_flags: <defaults>
</compile_context>

<pallas_src>
import math

import jax
import jax.numpy as jnp
from jax.experimental import pallas as pl
from jax.experimental.pallas import tpu as pltpu


# Problem sizes implied by the module: Linear(3, 2) applied to (1, 2, 3).
S, IN, OUT = 2, 3, 2

# Slab row layout (single (8, 128) f32 VMEM tile):
#   rows [0, IN)            cols [0, S)  : xT      (IN, S),  xT[k, s] = x[s, k]
#   rows [IN, IN+OUT)       cols [0, IN) : W       (OUT, IN)
#   rows [IN+OUT, IN+2*OUT) cols [0, S)  : bias broadcast to (OUT, S)
_XT_R0 = 0
_W_R0 = IN
_B_R0 = IN + OUT


def linear_permute_kernel(slab_ref, o_ref):
    """Fused linear + permute(0, 2, 1); single packed VMEM input, VPU-only.

    slab_ref : (8, 128)  packed [xT | W | bias] slab
    o_ref    : (OUT, S)  output, already in the permuted layout
    """
    xT = slab_ref[_XT_R0:_XT_R0 + IN, 0:S]      # (IN, S)
    w = slab_ref[_W_R0:_W_R0 + OUT, 0:IN]       # (OUT, IN)
    y = slab_ref[_B_R0:_B_R0 + OUT, 0:S]        # (OUT, S) -- start from bias

    # o[j, s] = b[j] + sum_k W[j, k] * x[s, k], unrolled over IN = 3:
    # each term is a (OUT, 1) * (1, S) broadcast multiply-add on the VALU
    # (no 3-D intermediate, no XLU reduce, no MXU fill/drain).
    y = y + w[:, 0:1] * xT[0:1, :]
    y = y + w[:, 1:2] * xT[1:2, :]
    y = y + w[:, 2:3] * xT[2:3, :]

    o_ref[...] = y.astype(o_ref.dtype)


def linear_permute(x, weight, bias):
    """x: (B, S, IN) -> returns (B, OUT, S), matching permute(0, 2, 1)."""
    B, s, in_f = x.shape
    out_f = weight.shape[0]
    assert (B, s, in_f, out_f) == (1, S, IN, OUT)

    # Pack everything into ONE VMEM-aligned slab -> one input DMA.
    x2d = x.reshape(S, IN).astype(jnp.float32)
    slab = jnp.zeros((8, 128), jnp.float32)
    slab = slab.at[_XT_R0:_XT_R0 + IN, 0:S].set(x2d.T)
    slab = slab.at[_W_R0:_W_R0 + OUT, 0:IN].set(weight.astype(jnp.float32))
    slab = slab.at[_B_R0:_B_R0 + OUT, 0:S].set(
        jnp.broadcast_to(bias.astype(jnp.float32)[:, None], (OUT, S))
    )

    out2d = pl.pallas_call(
        linear_permute_kernel,
        out_shape=jax.ShapeDtypeStruct((OUT, S), x.dtype),
        in_specs=[pl.BlockSpec(memory_space=pltpu.MemorySpace.VMEM)],
        out_specs=pl.BlockSpec(memory_space=pltpu.MemorySpace.VMEM),
        cost_estimate=pl.CostEstimate(
            flops=2 * OUT * S * IN,          # 24
            transcendentals=0,
            bytes_accessed=(S * IN + OUT * IN + OUT + OUT * S) * 4,  # ~72 useful bytes
        ),
    )(slab)

    return out2d.reshape(B, OUT, S)


@jax.jit
def model_forward(x0, weight, bias):
    # glue: the "view" step — reshape (1, 3, 2) -> (1, 2, 3) so in_features = 3
    v0 = x0.reshape(1, S, IN)
    # fused linear + permute(0, 2, 1) via the Pallas kernel
    return linear_permute(v0, weight, bias)


if __name__ == "__main__":
    key = jax.random.PRNGKey(0)
    k_x, k_w, k_b = jax.random.split(key, 3)

    # input matching the PyTorch script: x0 = torch.randn(1, 3, 2)
    x0 = jax.random.normal(k_x, (1, 3, 2), dtype=jnp.float32)

    # deterministic nn.Linear(3, 2) init: U(-1/sqrt(in), 1/sqrt(in))
    bound = 1.0 / math.sqrt(IN)
    weight = jax.random.uniform(
        k_w, (OUT, IN), jnp.float32, minval=-bound, maxval=bound
    )
    bias = jax.random.uniform(
        k_b, (OUT,), jnp.float32, minval=-bound, maxval=bound
    )

    out = model_forward(x0, weight, bias)
    out = jax.block_until_ready(out)

    # reference check in plain JAX
    ref = jnp.transpose(x0.reshape(1, S, IN) @ weight.T + bias, (0, 2, 1))
    assert out.shape == (1, OUT, S), out.shape
    assert jnp.allclose(out, ref, atol=1e-5), (out, ref)

    print("KERNEL_OK")
</pallas_src>

<mosaic_0001>
module attributes {stable_mosaic.version = 11 : i64} {
  func.func @linear_permute_kernel(%arg0: memref<8x128xf32, #tpu.memory_space<vmem>>, %arg1: memref<2x2xf32, #tpu.memory_space<vmem>>) attributes {dimension_semantics = [], scalar_prefetch = 0 : i64, scratch_operands = 0 : i64, tpu.core_type = #tpu.core_type<tc>} {
    %c0 = arith.constant 0 : index
    %c0_0 = arith.constant 0 : index
    %0 = vector.load %arg0[%c0, %c0_0] : memref<8x128xf32, #tpu.memory_space<vmem>>, vector<3x2xf32>
    %c3 = arith.constant 3 : index
    %c0_1 = arith.constant 0 : index
    %1 = vector.load %arg0[%c3, %c0_1] : memref<8x128xf32, #tpu.memory_space<vmem>>, vector<2x3xf32>
    %c5 = arith.constant 5 : index
    %c0_2 = arith.constant 0 : index
    %2 = vector.load %arg0[%c5, %c0_2] : memref<8x128xf32, #tpu.memory_space<vmem>>, vector<2x2xf32>
    %3 = vector.extract_strided_slice %1 {offsets = [0, 0], sizes = [2, 1], strides = [1, 1]} : vector<2x3xf32> to vector<2x1xf32>
    %4 = vector.extract_strided_slice %0 {offsets = [0, 0], sizes = [1, 2], strides = [1, 1]} : vector<3x2xf32> to vector<1x2xf32>
    %5 = vector.broadcast %3 : vector<2x1xf32> to vector<2x2xf32>
    %6 = vector.broadcast %4 : vector<1x2xf32> to vector<2x2xf32>
    %7 = arith.mulf %5, %6 : vector<2x2xf32>
    %8 = arith.addf %2, %7 : vector<2x2xf32>
    %9 = vector.extract_strided_slice %1 {offsets = [0, 1], sizes = [2, 1], strides = [1, 1]} : vector<2x3xf32> to vector<2x1xf32>
    %10 = vector.extract_strided_slice %0 {offsets = [1, 0], sizes = [1, 2], strides = [1, 1]} : vector<3x2xf32> to vector<1x2xf32>
    %11 = vector.broadcast %9 : vector<2x1xf32> to vector<2x2xf32>
    %12 = vector.broadcast %10 : vector<1x2xf32> to vector<2x2xf32>
    %13 = arith.mulf %11, %12 : vector<2x2xf32>
    %14 = arith.addf %8, %13 : vector<2x2xf32>
    %15 = vector.extract_strided_slice %1 {offsets = [0, 2], sizes = [2, 1], strides = [1, 1]} : vector<2x3xf32> to vector<2x1xf32>
    %16 = vector.extract_strided_slice %0 {offsets = [2, 0], sizes = [1, 2], strides = [1, 1]} : vector<3x2xf32> to vector<1x2xf32>
    %17 = vector.broadcast %15 : vector<2x1xf32> to vector<2x2xf32>
    %18 = vector.broadcast %16 : vector<1x2xf32> to vector<2x2xf32>
    %19 = arith.mulf %17, %18 : vector<2x2xf32>
    %20 = arith.addf %14, %19 : vector<2x2xf32>
    %c0_3 = arith.constant 0 : index
    %c0_4 = arith.constant 0 : index
    %21 = vector.load %arg1[%c0_3, %c0_4] : memref<2x2xf32, #tpu.memory_space<vmem>>, vector<2x2xf32>
    tpu.vector_store %arg1[%c0_3, %c0_4], %20 {strides = array<i32>} : memref<2x2xf32, #tpu.memory_space<vmem>>, vector<2x2xf32>,
    return
  }
}

</mosaic_0001>

<bundles_post_ra>
// kernel: model_forward.1
= control target key start
LH: loop header
LB: loop body
LE: loop exit
PB: predicated region body
PF: predicated region fallthrough
CT: control target
= control target key end

     0   :  { %v91_v1 = vmov 0   ;;  %v92_v2 = vmov 2   ;;  %s126_s0 = inlined_call_operand.vmem [shape: f32[8,128], index: 0, kind: input, shape index: {}]   ;;  %s127_s1 = inlined_call_operand.hbm [shape: f32[2,2], index: 1, kind: output, shape index: {}]  }
   0x1   :  { %v10_v0 = vld [vmem:[%s126_s0 + $0x3] sm:$0x3]  ;;  %63 = vset.pattern.permute.xlu0 %v91_v1  ;;  %65 = vset.pattern.permute.xlu1 %v92_v2 }
   0x2   :  { %6 = vsyncpa [#allocation3], 0  ;;  %14 = vperm.xlu0 %63, %v10_v0   ;;  %34 = vperm.xlu1 %65, %v10_v0   ;;  %v93_v3 = vmov 1   ;;  %v17_v4 = vlaneseq  ;;  %v9_v7 = vld [vmem:[%s126_s0] sm:$0x7]  ;;  %s94_s12 = smov [#allocation2]  }
   0x3   :  { %v11_v15 = vld [vmem:[%s126_s0 + $0x5] sm:$0x3]  ;;  %s51_s13 = sshll.u32 %s94_s12, 4  ;;  %vm43_vm0 = vcmask 9216   ;;  %s52_s13 = int_to_ptr.vmem [resolvable:$true] %s51_s13 }
   0x4   :  { %v18_v5 = vshrl.u32 %v17_v4, 7  ;;  %s67_s14 = scalar_lea.vmem %s52_s13, 32  ;;  %p72_p1 = scmp.lt.s32.totalorder %s52_s13, %s52_s13 }
   0x5   :  { %p68_p0 = scmp.ne.s32.totalorder %s52_s13, %s67_s14  ;;  %p73_p2 = scmp.lt.s32.totalorder %s67_s14, %s67_s14 }
   0x6   :  { %64 = vset.pattern.permute.xlu0 %v93_v3  ;;  %v19_v6 = vsub.s32 0, %v18_v5  ;;  %v29_v9 = vsub.s32 1, %v18_v5  ;;  %v39_v10 = vsub.s32 2, %v18_v5 }
   0x7   :  { %24 = vperm.xlu0 %64, %v10_v0   ;;  %p74_p3 = por %p73_p2, %p72_p1 }
   0x8   :  { %v20_v8 = vrot.slane %v9_v7, %v19_v6  ;;  %v30_v13 = vrot.slane %v9_v7, %v29_v9  ;;  %v40_v14 = vrot.slane %v9_v7, %v39_v10 }
   0x9   :  { %p75_p4 = pnand %p74_p3, %p68_p0 }
   0xb   :  { %66 = vset.pattern.permute.xlu0 %v92_v2 }
  0x81   :  { %v15_v11 = vpop.permute.xlu0 %14  ;;  %v35_v16 = vpop.permute.xlu1 %34 }
  0x82   :  { %v21_v12 = vmul.f32 %v20_v8, %v15_v11  ;;  %v41_v20 = vmul.f32 %v40_v14, %v35_v16 }
  0x84   :  { %v22_v18 = vadd.f32 %v21_v12, %v11_v15 }
  0x86   :  { %v25_v17 = vpop.permute.xlu0 %24 }
  0x87   :  { %v31_v19 = vmul.f32 %v30_v13, %v25_v17 }
  0x89   :  { %v32_v21 = vadd.f32 %v31_v19, %v22_v18 }
  0x8b   :  { %v42_v22 = vadd.f32 %v41_v20, %v32_v21 }
  0x8d   :  { %44 = vst.msk [vmem:[#allocation2] sm:$0x3] %vm43_vm0, %v42_v22 }
  0x8e   :  { %78 = shalt.err (!%p75_p4)
}
  0x8f   :  { %s79_s16 = scalar_lea.hbm %s127_s1, 32 }
  0x90   :  { %p80_p5 = scmp.ne.s32.totalorder %s127_s1, %s79_s16  ;;  %p83_p6 = scmp.lt.u32.totalorder %s79_s16, %s127_s1 }
  0x92   :  { %p85_p7 = pnand %p83_p6, %p80_p5 }
  0x94   :  { %88 = shalt.err (!%p85_p7)
}
  0x95   :  { %54 = dma.vmem_to_hbm [thread:$0]  %s52_s13, 32, %s127_s1, [#allocation3]  }
  0x96   :  { %89 = dma.done.wait [#allocation3], 32  }
  0x97   :  { %90 = vsyncadd [#allocation3], 4294967264 }
  0x98   :  { %58 = vsyncpa [#allocation3], 1 }

</bundles_post_ra>
